<compile_context>
chip_gen: v6e
topology: v6e:2x2x1
jax: 0.10.0
libtpu: 0.0.40
codegen_flags: <defaults>
</compile_context>

<pallas_src>
import functools

import jax
import jax.numpy as jnp
from jax.experimental import pallas as pl
from jax.experimental.pallas import tpu as pltpu


def _round_up(a, m):
    return -(-a // m) * m


def weight_norm_conv2d(x, v, g, b, *, stride=1, padding=0,
                       compute_dtype=jnp.bfloat16):
    """Weight-normalized conv2d forward (NCHW), like WeightNormConv2d.forward.

    x: (N, Cin, H, W).  v: (Cout, Cin, kh, kw) [weight_v].
    g: (Cout,) [weight_g; all-ones when scale=False].  b: (Cout,) bias.
    """
    n, cin, h, w = x.shape
    cout, cin_w, kh, kw = v.shape
    assert cin == cin_w, (cin, cin_w)
    s, p = int(stride), int(padding)

    hp, wp = h + 2 * p, w + 2 * p
    ohf, owf = hp - kh + 1, wp - kw + 1            # full (stride-1) output extent
    assert ohf >= 1 and owf >= 1, "kernel larger than padded input"
    oh = (h + 2 * p - kh) // s + 1                 # strided output extent
    ow = (w + 2 * p - kw) // s + 1
    khkw = kh * kw
    l_out = ohf * wp                               # stride-1 flat output cols / image
    halo = (kh - 1) * wp + (kw - 1)                # extra input cols a tile needs

    out_itemsize = jnp.dtype(x.dtype).itemsize
    cb = jnp.dtype(compute_dtype).itemsize

    # ---- VMEM footprint model ((8,128)-tiled, dtype-packed) -----------------
    def _pad2(rows, cols, itemsize):
        sub = 8 * max(1, 4 // itemsize)            # 8 (f32) / 16 (bf16) sublanes
        return _round_up(max(rows, 1), sub) * _round_up(max(cols, 1), 128) * itemsize

    def _footprint(tl):
        l_pad_t = _round_up(l_out, tl)
        lp_t = _round_up(halo + l_pad_t, 128)
        return (2 * _pad2(cin, lp_t, cb)           # x image block, double-buffered
                + 2 * _pad2(cout, tl, out_itemsize)    # output tile, double-buffered
                + 2 * khkw * _pad2(cout, cin, cb)      # per-tap weights (2x, safe)
                + 2 * _pad2(cout, 1, 4)                # bias
                + _pad2(cout, tl, 4)                   # f32 accumulator (may spill)
                + 2 * _pad2(cin, tl + halo, cb))       # in-flight window/slices

    try:
        vmem_cap = pltpu.get_tpu_info().vmem_capacity_bytes   # 64 MiB v7x, 128 MiB v5e/v6e
    except Exception:
        vmem_cap = 64 * 1024 * 1024                 # v7x-safe fallback
    budget = int(0.6 * vmem_cap)

    # ---- lane tile: whole image per grid step if it fits, else split --------
    tl = _round_up(l_out, 128)
    while tl > 128 and _footprint(tl) > budget:
        tl -= 128
    if n == 1 and l_out > 128 and _round_up(l_out, tl) // tl < 2:
        # keep >= 2 grid steps so both v7x TensorCores get work
        tl = _round_up(-(-l_out // 2), 128)
    l_pad = _round_up(l_out, tl)
    n_tiles = l_pad // tl
    lp = _round_up(halo + l_pad, 128)

    # ---- hoisted weight normalization (tiny; once, not per grid step) -------
    # No epsilon, matching torch weight_norm exactly: an all-zero V row -> inf/NaN.
    v_flat = v.reshape(cout, cin * khkw).astype(jnp.float32)
    norm = jnp.sqrt(jnp.sum(v_flat * v_flat, axis=1, keepdims=True))        # (Cout, 1)
    w_mat = (v.astype(jnp.float32)
             * (g.reshape(cout, 1, 1, 1).astype(jnp.float32)
                / norm.reshape(cout, 1, 1, 1)))                             # (Cout,Cin,kh,kw)
    # per-tap layout (kh*kw, Cout, Cin); tap index t = i*kw + j
    w_taps = w_mat.transpose(2, 3, 0, 1).reshape(khkw, cout, cin).astype(compute_dtype)
    b_col = b.reshape(cout, 1).astype(jnp.float32)

    # ---- pad + flatten input (minor-dim ops only; NO im2col, NO transpose) --
    xp = jnp.pad(x, ((0, 0), (0, 0), (p, p), (p, p))).reshape(n, cin, hp * wp)
    x_flat = jnp.pad(xp, ((0, 0), (0, 0), (0, lp - hp * wp))).astype(compute_dtype)

    tap_offsets = tuple(i * wp + j for i in range(kh) for j in range(kw))

    def kernel(w_ref, b_ref, x_ref, o_ref):
        # w_ref: (kh*kw, Cout, Cin) pre-normalized per-tap weights (resident)
        # b_ref: (Cout, 1) f32 bias (resident)
        # x_ref: (Cin, Lp)  zero-padded, flattened image for one batch item
        # o_ref: (Cout, TL) lane-dense output column tile
        if n_tiles == 1:
            xwin = x_ref[:, pl.ds(0, tl + halo)]                 # (Cin, TL + halo)
        else:
            col0 = pl.multiple_of(pl.program_id(1) * tl, 128)    # aligned dynamic start
            xwin = x_ref[:, pl.ds(col0, tl + halo)]
        acc = None
        for t, off in enumerate(tap_offsets):                    # static unroll: kh*kw
            xs = xwin[:, off:off + tl]                           # (Cin, TL) shifted view
            d = jnp.dot(w_ref[t], xs, preferred_element_type=jnp.float32)   # MXU
            acc = d if acc is None else acc + d
        o_ref[...] = (acc + b_ref[...]).astype(o_ref.dtype)

    vmem_limit = int(min(0.9 * vmem_cap,
                         max(32 * 1024 * 1024,
                             2 * _footprint(tl) + 8 * 1024 * 1024)))

    cost = pl.CostEstimate(
        flops=2 * n * khkw * cout * cin * l_pad,
        transcendentals=0,
        bytes_accessed=(n * n_tiles * cin * lp * cb              # x (refetched per tile)
                        + khkw * cout * cin * cb + cout * 4
                        + n * cout * l_pad * out_itemsize))

    out = pl.pallas_call(
        kernel,
        out_shape=jax.ShapeDtypeStruct((n, cout, l_pad), x.dtype),
        grid_spec=pltpu.PrefetchScalarGridSpec(
            num_scalar_prefetch=0,
            grid=(n, n_tiles),
            in_specs=[
                pl.BlockSpec((khkw, cout, cin), lambda bi, ci: (0, 0, 0)),  # W taps
                pl.BlockSpec((cout, 1), lambda bi, ci: (0, 0)),             # bias
                pl.BlockSpec((None, cin, lp), lambda bi, ci: (bi, 0, 0)),   # image
            ],
            out_specs=pl.BlockSpec((None, cout, tl), lambda bi, ci: (bi, 0, ci)),
        ),
        compiler_params=pltpu.CompilerParams(
            dimension_semantics=("parallel", "parallel"),
            vmem_limit_bytes=vmem_limit),
        cost_estimate=cost,
    )(w_taps, b_col, x_flat)

    # (N, Cout, L_pad) -> (N, Cout, OHf, Wp); cols >= OWf per row are garbage and
    # dropped; stride > 1 is a subsample of the stride-1 output.
    y_full = out[:, :, :l_out].reshape(n, cout, ohf, wp)
    return y_full[:, :, ::s, ::s][:, :, :oh, :ow]


def _reference(x, v, g, b, *, stride, padding):
    """Pure-JAX reference: weight-normalized conv2d (NCHW)."""
    norm = jnp.sqrt(jnp.sum(v * v, axis=(1, 2, 3), keepdims=True))
    w = v * (g.reshape(-1, 1, 1, 1) / norm)
    y = jax.lax.conv_general_dilated(
        x, w, window_strides=(stride, stride),
        padding=[(padding, padding), (padding, padding)],
        dimension_numbers=("NCHW", "OIHW", "NCHW"),
        precision=jax.lax.Precision.HIGHEST)
    return y + b.reshape(1, -1, 1, 1)


if __name__ == "__main__":
    # WeightNormConv2d(in_dim=4, out_dim=8, kernel_size=3, stride=1,
    #                  padding=1, bias=True, weight_norm=True, scale=False)
    in_dim, out_dim, ksize, stride, padding = 4, 8, 3, 1, 1
    key = jax.random.PRNGKey(0)
    kx, kv, kb = jax.random.split(key, 3)

    x = jax.random.normal(kx, (2, in_dim, 16, 16), dtype=jnp.float32)
    # deterministic synthetic parameters (not a checkpoint)
    v = jax.random.normal(kv, (out_dim, in_dim, ksize, ksize),
                          dtype=jnp.float32) * 0.1
    g = jnp.ones((out_dim,), dtype=jnp.float32)   # scale=False -> g frozen at 1
    b = jax.random.normal(kb, (out_dim,), dtype=jnp.float32) * 0.05

    y_ref = _reference(x, v, g, b, stride=stride, padding=padding)

    # Exactness path: f32 streaming, tight tolerance.
    fwd_f32 = jax.jit(functools.partial(weight_norm_conv2d, stride=stride,
                                        padding=padding,
                                        compute_dtype=jnp.float32))
    y32 = jax.block_until_ready(fwd_f32(x, v, g, b))
    assert y32.shape == (2, out_dim, 16, 16), y32.shape
    assert jnp.allclose(y32, y_ref, atol=5e-5, rtol=5e-5), \
        float(jnp.max(jnp.abs(y32 - y_ref)))

    # Performance path (default): bf16 streaming, f32 accumulation.
    fwd_bf16 = jax.jit(functools.partial(weight_norm_conv2d, stride=stride,
                                         padding=padding))
    y16 = jax.block_until_ready(fwd_bf16(x, v, g, b))
    assert y16.shape == (2, out_dim, 16, 16), y16.shape
    assert jnp.allclose(y16, y_ref, atol=6e-2, rtol=6e-2), \
        float(jnp.max(jnp.abs(y16 - y_ref)))

    print("KERNEL_OK")
</pallas_src>

<mosaic_0001>
module attributes {stable_mosaic.version = 11 : i64} {
  func.func @kernel(%arg0: i32, %arg1: i32, %arg2: memref<9x8x4xf32, #tpu.memory_space<vmem>>, %arg3: memref<8x1xf32, #tpu.memory_space<vmem>>, %arg4: memref<1x4x512xf32, #tpu.memory_space<vmem>>, %arg5: memref<1x8x384xf32, #tpu.memory_space<vmem>>) attributes {dimension_semantics = [#tpu.dimension_semantics<parallel>, #tpu.dimension_semantics<parallel>], iteration_bounds = array<i64: 2, 1>, scalar_prefetch = 0 : i64, scratch_operands = 0 : i64, tpu.core_type = #tpu.core_type<tc>, window_params = [{pipeline_mode = #tpu.pipeline_mode<synchronous>, transform_indices = @transform_0, window_bounds = array<i64: 9, 8, 4>}, {pipeline_mode = #tpu.pipeline_mode<synchronous>, transform_indices = @transform_1, window_bounds = array<i64: 8, 1>}, {transform_indices = @transform_2, window_bounds = array<i64: 1, 4, 512>}, {transform_indices = @transform_3, window_bounds = array<i64: 1, 8, 384>}]} {
    %c0 = arith.constant 0 : index
    %c0_0 = arith.constant 0 : index
    %c0_1 = arith.constant 0 : index
    %0 = vector.load %arg4[%c0, %c0_0, %c0_1] : memref<1x4x512xf32, #tpu.memory_space<vmem>>, vector<1x4x422xf32>
    %1 = vector.shape_cast %0 : vector<1x4x422xf32> to vector<4x422xf32>
    %2 = vector.extract_strided_slice %1 {offsets = [0, 0], sizes = [4, 384], strides = [1, 1]} : vector<4x422xf32> to vector<4x384xf32>
    %c0_2 = arith.constant 0 : index
    %c0_3 = arith.constant 0 : index
    %c0_4 = arith.constant 0 : index
    %3 = vector.load %arg2[%c0_2, %c0_3, %c0_4] : memref<9x8x4xf32, #tpu.memory_space<vmem>>, vector<1x8x4xf32>
    %4 = vector.shape_cast %3 : vector<1x8x4xf32> to vector<8x4xf32>
    %cst = arith.constant dense<0.000000e+00> : vector<8x384xf32>
    %5 = tpu.matmul %4, %2, %cst {dimension_numbers = #tpu.dot_dimension_numbers<[1], [0], [0], [1], [0, 0, 1, 1], [], []>} : vector<8x4xf32>, vector<4x384xf32>, vector<8x384xf32> -> vector<8x384xf32>
    %6 = vector.extract_strided_slice %1 {offsets = [0, 1], sizes = [4, 384], strides = [1, 1]} : vector<4x422xf32> to vector<4x384xf32>
    %c1 = arith.constant 1 : index
    %c0_5 = arith.constant 0 : index
    %c0_6 = arith.constant 0 : index
    %7 = vector.load %arg2[%c1, %c0_5, %c0_6] : memref<9x8x4xf32, #tpu.memory_space<vmem>>, vector<1x8x4xf32>
    %8 = vector.shape_cast %7 : vector<1x8x4xf32> to vector<8x4xf32>
    %cst_7 = arith.constant dense<0.000000e+00> : vector<8x384xf32>
    %9 = tpu.matmul %8, %6, %cst_7 {dimension_numbers = #tpu.dot_dimension_numbers<[1], [0], [0], [1], [0, 0, 1, 1], [], []>} : vector<8x4xf32>, vector<4x384xf32>, vector<8x384xf32> -> vector<8x384xf32>
    %10 = arith.addf %5, %9 : vector<8x384xf32>
    %11 = vector.extract_strided_slice %1 {offsets = [0, 2], sizes = [4, 384], strides = [1, 1]} : vector<4x422xf32> to vector<4x384xf32>
    %c2 = arith.constant 2 : index
    %c0_8 = arith.constant 0 : index
    %c0_9 = arith.constant 0 : index
    %12 = vector.load %arg2[%c2, %c0_8, %c0_9] : memref<9x8x4xf32, #tpu.memory_space<vmem>>, vector<1x8x4xf32>
    %13 = vector.shape_cast %12 : vector<1x8x4xf32> to vector<8x4xf32>
    %cst_10 = arith.constant dense<0.000000e+00> : vector<8x384xf32>
    %14 = tpu.matmul %13, %11, %cst_10 {dimension_numbers = #tpu.dot_dimension_numbers<[1], [0], [0], [1], [0, 0, 1, 1], [], []>} : vector<8x4xf32>, vector<4x384xf32>, vector<8x384xf32> -> vector<8x384xf32>
    %15 = arith.addf %10, %14 : vector<8x384xf32>
    %16 = vector.extract_strided_slice %1 {offsets = [0, 18], sizes = [4, 384], strides = [1, 1]} : vector<4x422xf32> to vector<4x384xf32>
    %c3 = arith.constant 3 : index
    %c0_11 = arith.constant 0 : index
    %c0_12 = arith.constant 0 : index
    %17 = vector.load %arg2[%c3, %c0_11, %c0_12] : memref<9x8x4xf32, #tpu.memory_space<vmem>>, vector<1x8x4xf32>
    %18 = vector.shape_cast %17 : vector<1x8x4xf32> to vector<8x4xf32>
    %cst_13 = arith.constant dense<0.000000e+00> : vector<8x384xf32>
    %19 = tpu.matmul %18, %16, %cst_13 {dimension_numbers = #tpu.dot_dimension_numbers<[1], [0], [0], [1], [0, 0, 1, 1], [], []>} : vector<8x4xf32>, vector<4x384xf32>, vector<8x384xf32> -> vector<8x384xf32>
    %20 = arith.addf %15, %19 : vector<8x384xf32>
    %21 = vector.extract_strided_slice %1 {offsets = [0, 19], sizes = [4, 384], strides = [1, 1]} : vector<4x422xf32> to vector<4x384xf32>
    %c4 = arith.constant 4 : index
    %c0_14 = arith.constant 0 : index
    %c0_15 = arith.constant 0 : index
    %22 = vector.load %arg2[%c4, %c0_14, %c0_15] : memref<9x8x4xf32, #tpu.memory_space<vmem>>, vector<1x8x4xf32>
    %23 = vector.shape_cast %22 : vector<1x8x4xf32> to vector<8x4xf32>
    %cst_16 = arith.constant dense<0.000000e+00> : vector<8x384xf32>
    %24 = tpu.matmul %23, %21, %cst_16 {dimension_numbers = #tpu.dot_dimension_numbers<[1], [0], [0], [1], [0, 0, 1, 1], [], []>} : vector<8x4xf32>, vector<4x384xf32>, vector<8x384xf32> -> vector<8x384xf32>
    %25 = arith.addf %20, %24 : vector<8x384xf32>
    %26 = vector.extract_strided_slice %1 {offsets = [0, 20], sizes = [4, 384], strides = [1, 1]} : vector<4x422xf32> to vector<4x384xf32>
    %c5 = arith.constant 5 : index
    %c0_17 = arith.constant 0 : index
    %c0_18 = arith.constant 0 : index
    %27 = vector.load %arg2[%c5, %c0_17, %c0_18] : memref<9x8x4xf32, #tpu.memory_space<vmem>>, vector<1x8x4xf32>
    %28 = vector.shape_cast %27 : vector<1x8x4xf32> to vector<8x4xf32>
    %cst_19 = arith.constant dense<0.000000e+00> : vector<8x384xf32>
    %29 = tpu.matmul %28, %26, %cst_19 {dimension_numbers = #tpu.dot_dimension_numbers<[1], [0], [0], [1], [0, 0, 1, 1], [], []>} : vector<8x4xf32>, vector<4x384xf32>, vector<8x384xf32> -> vector<8x384xf32>
    %30 = arith.addf %25, %29 : vector<8x384xf32>
    %31 = vector.extract_strided_slice %1 {offsets = [0, 36], sizes = [4, 384], strides = [1, 1]} : vector<4x422xf32> to vector<4x384xf32>
    %c6 = arith.constant 6 : index
    %c0_20 = arith.constant 0 : index
    %c0_21 = arith.constant 0 : index
    %32 = vector.load %arg2[%c6, %c0_20, %c0_21] : memref<9x8x4xf32, #tpu.memory_space<vmem>>, vector<1x8x4xf32>
    %33 = vector.shape_cast %32 : vector<1x8x4xf32> to vector<8x4xf32>
    %cst_22 = arith.constant dense<0.000000e+00> : vector<8x384xf32>
    %34 = tpu.matmul %33, %31, %cst_22 {dimension_numbers = #tpu.dot_dimension_numbers<[1], [0], [0], [1], [0, 0, 1, 1], [], []>} : vector<8x4xf32>, vector<4x384xf32>, vector<8x384xf32> -> vector<8x384xf32>
    %35 = arith.addf %30, %34 : vector<8x384xf32>
    %36 = vector.extract_strided_slice %1 {offsets = [0, 37], sizes = [4, 384], strides = [1, 1]} : vector<4x422xf32> to vector<4x384xf32>
    %c7 = arith.constant 7 : index
    %c0_23 = arith.constant 0 : index
    %c0_24 = arith.constant 0 : index
    %37 = vector.load %arg2[%c7, %c0_23, %c0_24] : memref<9x8x4xf32, #tpu.memory_space<vmem>>, vector<1x8x4xf32>
    %38 = vector.shape_cast %37 : vector<1x8x4xf32> to vector<8x4xf32>
    %cst_25 = arith.constant dense<0.000000e+00> : vector<8x384xf32>
    %39 = tpu.matmul %38, %36, %cst_25 {dimension_numbers = #tpu.dot_dimension_numbers<[1], [0], [0], [1], [0, 0, 1, 1], [], []>} : vector<8x4xf32>, vector<4x384xf32>, vector<8x384xf32> -> vector<8x384xf32>
    %40 = arith.addf %35, %39 : vector<8x384xf32>
    %41 = vector.extract_strided_slice %1 {offsets = [0, 38], sizes = [4, 384], strides = [1, 1]} : vector<4x422xf32> to vector<4x384xf32>
    %c8 = arith.constant 8 : index
    %c0_26 = arith.constant 0 : index
    %c0_27 = arith.constant 0 : index
    %42 = vector.load %arg2[%c8, %c0_26, %c0_27] : memref<9x8x4xf32, #tpu.memory_space<vmem>>, vector<1x8x4xf32>
    %43 = vector.shape_cast %42 : vector<1x8x4xf32> to vector<8x4xf32>
    %cst_28 = arith.constant dense<0.000000e+00> : vector<8x384xf32>
    %44 = tpu.matmul %43, %41, %cst_28 {dimension_numbers = #tpu.dot_dimension_numbers<[1], [0], [0], [1], [0, 0, 1, 1], [], []>} : vector<8x4xf32>, vector<4x384xf32>, vector<8x384xf32> -> vector<8x384xf32>
    %45 = arith.addf %40, %44 : vector<8x384xf32>
    %c0_29 = arith.constant 0 : index
    %c0_30 = arith.constant 0 : index
    %46 = vector.load %arg3[%c0_29, %c0_30] : memref<8x1xf32, #tpu.memory_space<vmem>>, vector<8x1xf32>
    %47 = vector.broadcast %46 : vector<8x1xf32> to vector<8x384xf32>
    %48 = arith.addf %45, %47 : vector<8x384xf32>
    %c0_31 = arith.constant 0 : index
    %c0_32 = arith.constant 0 : index
    %c0_33 = arith.constant 0 : index
    %49 = vector.load %arg5[%c0_31, %c0_32, %c0_33] : memref<1x8x384xf32, #tpu.memory_space<vmem>>, vector<1x8x384xf32>
    %50 = vector.shape_cast %49 : vector<1x8x384xf32> to vector<8x384xf32>
    %51 = vector.shape_cast %48 : vector<8x384xf32> to vector<1x8x384xf32>
    tpu.vector_store %arg5[%c0_31, %c0_32, %c0_33], %51 {strides = array<i32>} : memref<1x8x384xf32, #tpu.memory_space<vmem>>, vector<1x8x384xf32>,
    return
  }
  func.func @transform_0(%arg0: i32, %arg1: i32) -> (i32, i32, i32) {
    %c0_i32 = arith.constant 0 : i32
    %c0_i32_0 = arith.constant 0 : i32
    %c0_i32_1 = arith.constant 0 : i32
    %c0_i32_2 = arith.constant 0 : i32
    return %c0_i32, %c0_i32_0, %c0_i32_1 : i32, i32, i32
  }
  func.func @transform_1(%arg0: i32, %arg1: i32) -> (i32, i32) {
    %c0_i32 = arith.constant 0 : i32
    %c0_i32_0 = arith.constant 0 : i32
    %c0_i32_1 = arith.constant 0 : i32
    return %c0_i32, %c0_i32_0 : i32, i32
  }
  func.func @transform_2(%arg0: i32, %arg1: i32) -> (i32, i32, i32) {
    %c0_i32 = arith.constant 0 : i32
    %c0_i32_0 = arith.constant 0 : i32
    %c0_i32_1 = arith.constant 0 : i32
    return %arg0, %c0_i32, %c0_i32_0 : i32, i32, i32
  }
  func.func @transform_3(%arg0: i32, %arg1: i32) -> (i32, i32, i32) {
    %c0_i32 = arith.constant 0 : i32
    %c0_i32_0 = arith.constant 0 : i32
    return %arg0, %c0_i32, %arg1 : i32, i32, i32
  }
}

</mosaic_0001>

<bundles_post_ra>
// kernel: weight_norm_conv2d.1
= control target key start
LH: loop header
LB: loop body
LE: loop exit
PB: predicated region body
PF: predicated region fallthrough
CT: control target
= control target key end

     0   :  { %s2000_s12 = smov 0   ;;  %s2002_s13 = smov 0   ;;  %s2183_s0 = inlined_call_operand.vmem [shape: f32[9,8,4], index: 0, kind: input, shape index: {}]   ;;  %s2184_s1 = inlined_call_operand.vmem [shape: f32[8,1], index: 1, kind: input, shape index: {}]   ;;  %s2185_s2 = inlined_call_operand.vmem [shape: f32[2,4,512], index: 2, kind: input, shape index: {}]   ;;  %s2186_s3 = inlined_call_operand.vmem [shape: f32[2,8,384], index: 3, kind: output, shape index: {}]  }
   0x1   :  { %s2004_s14 = smov 0  }
   0x2 LB: > { %s25_s15 = sadd.s32 1, %s1963_s13  ;;  %p1783_p0 = scmp.ge.s32.totalorder %s1967_s14, 1  ;;  %s1967_s14 = sphi %s2004_s14, %s13_s14   ;;  %s1963_s13 = sphi %s2002_s13, %s2188_s13   ;;  %s1959_s12 = sphi %s2000_s12, %s2187_s12  }
   0x3   : > { %p27_p1 = scmp.ge.s32.totalorder %s25_s15, 2  ;;  %p151_p2 = scmp.lt.s32.totalorder %s1967_s14, 3 }
   0x5   : > { %s2190_s15 = smov (%p27_p1, %s25_s15), 0  ;;  %p152_p3 = pnand %p1783_p0, %p151_p2 }
   0x6   : > { %p179_p4 = scmp.lt.s32.totalorder (!%p152_p3), %s1959_s12, 1  ;;  %s1971_s20 = smov (!%p152_p3), 127  }
   0x7   : > { %155 = sbr.rel (%p152_p3) target bundleno = 393 (0x189), region = 32  ;;  %s1972_s21 = smov (!%p152_p3), 126  }
   0x8   : > { %s1973_s22 = smov (!%p152_p3), 110   ;;  %s1974_s23 = smov (!%p152_p3), 109  }
   0x9   : > { %s1975_s24 = smov (!%p152_p3), 108   ;;  %s1976_s25 = smov (!%p152_p3), 92  }
   0xa   : > { %s1977_s26 = smov (!%p152_p3), 91   ;;  %s1979_s27 = smov (!%p152_p3), 90  }
   0xc   : > { %v1969_v0 = vmov 0.0   ;;  %s2192_s12 = smov (!%p179_p4, %s1959_s12), 1  ;;  %vm1970_vm0 = vmmov 0   ;;  %v1978_v5 = vmov 0   ;;  %v1686_v6 = vld [vmem:[%s2184_s1] sm:$0xff]  ;;  %vm211_vm1 = vcmask 1039360  }
   0xd   : > { %290 = vmatprep.mubr.f32.mxu0 %v1969_v0  ;;  %1861 = vmatprep.subr.mxu1 %v1969_v0  ;;  %s1842_s16 = sshll.u32 %s2192_s12, 4  ;;  %vm219_vm2 = vcmask 1043456   ;;  %v1787_v13 = vld [vmem:[%s2183_s0 + $0x8] sm:$0xff]  ;;  %vm215_vm3 = vcmask 31744   ;;  %vm527_vm4 = vcmask 1031168   ;;  %v196_v18 = vld [vmem:[%s2183_s0] sm:$0xff] }
   0xe   : > { %1863 = vmatprep.mubr.msk.f32.mxu1 %vm1970_vm0, %v1969_v0  ;;  %s183_s19 = scalar_lea.vmem %s2185_s2, %s1842_s16  ;;  %1942 = vset.pattern.permute.xlu0 %v1978_v5  ;;  %vm694_vm5 = vcmask 900096   ;;  %v1798_v23 = vld [vmem:[%s2183_s0 + $0x10] sm:$0xff]  ;;  %v1804_v29 = vld [vmem:[%s2183_s0 + $0x18] sm:$0xff]  ;;  %vm861_vm6 = vcmask 891904   ;;  %v1810_v37 = vld [vmem:[%s2183_s0 + $0x20] sm:$0xff]  ;;  %vm1028_vm7 = vcmask 883712  }
   0xf   : > { %v2028_v1 = vld [vmem:[%s183_s19 + $0x8] sm:$0xff]  ;;  %v2030_v2 = vld [vmem:[%s183_s19] sm:$0xff]  ;;  %vm1195_vm8 = vcmask 752640   ;;  %v1822_v53 = vld [vmem:[%s2183_s0 + $0x30] sm:$0xff]  ;;  %vm1362_vm9 = vcmask 744448   ;;  %vm1529_vm10 = vcmask 736256  }
  0x10   : > { %207 = vrot.lane.b32.xlu0 %v2028_v1, %s1971_s20  ;;  %203 = vrot.lane.b32.xlu1 %v2030_v2, %s1971_s20  ;;  %v201_v3 = vcombine.high %v2030_v2, %v2030_v2  ;;  %v202_v4 = vcombine.high %v2028_v1, %v2028_v1  ;;  %v1816_v45 = vld [vmem:[%s2183_s0 + $0x28] sm:$0xff]  ;;  %v1828_v61 = vld [vmem:[%s2183_s0 + $0x38] sm:$0xff] }
  0x14   : > { %523 = vrot.lane.b32.xlu1 %v2028_v1, %s1972_s21  ;;  %205 = vrot.lane.b32.xlu0 %v201_v3, %s1971_s20 }
  0x18   : > { %209 = vrot.lane.b32.xlu1 %v202_v4, %s1971_s20  ;;  %521 = vrot.lane.b32.xlu0 %v201_v3, %s1972_s21 }
  0x1c   : > { %525 = vrot.lane.b32.xlu1 %v202_v4, %s1972_s21  ;;  %519 = vrot.lane.b32.xlu0 %v2030_v2, %s1972_s21 }
  0x20   : > { %690 = vrot.lane.b32.xlu1 %v2028_v1, %s1973_s22  ;;  %688 = vrot.lane.b32.xlu0 %v201_v3, %s1973_s22 }
  0x24   : > { %692 = vrot.lane.b32.xlu1 %v202_v4, %s1973_s22  ;;  %686 = vrot.lane.b32.xlu0 %v2030_v2, %s1973_s22 }
  0x28   : > { %857 = vrot.lane.b32.xlu1 %v2028_v1, %s1974_s23  ;;  %855 = vrot.lane.b32.xlu0 %v201_v3, %s1974_s23 }
  0x2c   : > { %859 = vrot.lane.b32.xlu1 %v202_v4, %s1974_s23  ;;  %853 = vrot.lane.b32.xlu0 %v2030_v2, %s1974_s23 }
  0x30   : > { %1024 = vrot.lane.b32.xlu1 %v2028_v1, %s1975_s24  ;;  %1022 = vrot.lane.b32.xlu0 %v201_v3, %s1975_s24 }
  0x34   : > { %1026 = vrot.lane.b32.xlu1 %v202_v4, %s1975_s24  ;;  %1020 = vrot.lane.b32.xlu0 %v2030_v2, %s1975_s24 }
  0x38   : > { %1191 = vrot.lane.b32.xlu1 %v2028_v1, %s1976_s25  ;;  %1189 = vrot.lane.b32.xlu0 %v201_v3, %s1976_s25 }
  0x3c   : > { %1193 = vrot.lane.b32.xlu1 %v202_v4, %s1976_s25  ;;  %1187 = vrot.lane.b32.xlu0 %v2030_v2, %s1976_s25  ;;  %s1906_s25 = smul.u32 24, %s2192_s12 }
  0x3e   : > { %s192_s28 = scalar_lea.vmem %s2186_s3, %s1906_s25 }
  0x40   : > { %1358 = vrot.lane.b32.xlu1 %v2028_v1, %s1977_s26  ;;  %1356 = vrot.lane.b32.xlu0 %v201_v3, %s1977_s26 }
  0x44   : > { %1360 = vrot.lane.b32.xlu1 %v202_v4, %s1977_s26  ;;  %1354 = vrot.lane.b32.xlu0 %v2030_v2, %s1977_s26 }
  0x48   : > { %1525 = vrot.lane.b32.xlu1 %v2028_v1, %s1979_s27  ;;  %1523 = vrot.lane.b32.xlu0 %v201_v3, %s1979_s27 }
  0x4c   : > { %1527 = vrot.lane.b32.xlu1 %v202_v4, %s1979_s27  ;;  %1521 = vrot.lane.b32.xlu0 %v2030_v2, %s1979_s27 }
  0x50   : > { %1689 = vperm.xlu0 %1942, %v1686_v6   ;;  %v1834_v6 = vld [vmem:[%s2183_s0 + $0x40] sm:$0xff] }
  0x82   : > { %v208_v7 = vpop.permute.xlu0 %207  ;;  %v204_v8 = vpop.permute.xlu1 %203 }
  0x86   : > { %v524_v9 = vpop.permute.xlu1 %523  ;;  %v206_v10 = vpop.permute.xlu0 %205 }
  0x87   : > { %v213_v11 = vsel %vm211_vm1, %v206_v10, %v208_v7  ;;  %v212_v12 = vsel %vm211_vm1, %v204_v8, %v206_v10 }
  0x88   : > { %1788 = vmatprep.subr.msk.mxu0 %vm219_vm2, %v213_v11 }
  0x89   : > { %1789 = vmatpush1.msk.msra.mxu0 %vm219_vm2, %v212_v12 }
  0x8a   : > { %v210_v14 = vpop.permute.xlu1 %209  ;;  %1793 = vmatprep.subr.msk.mxu0 %vm219_vm2, %v201_v3  ;;  %v522_v15 = vpop.permute.xlu0 %521  ;;  %1790 = vmatmul.mubr.msk.f32.vlgmr.msra.gmra.mxu0 %vm215_vm3, %v1787_v13 }
  0x8b   : > { %v529_v16 = vsel %vm527_vm4, %v522_v15, %v524_v9  ;;  %1794 = vmatpush1.msk.msra.mxu0 %vm219_vm2, %v2030_v2  ;;  %v214_v17 = vsel %vm211_vm1, %v208_v7, %v210_v14  ;;  %440 = vmatprep.mubr.f32.mxu0 %v1969_v0 }
  0x8c   : > { %1862 = vmatpush3.msk.msra.mxu1 %vm219_vm2, %v214_v17  ;;  %1799 = vmatprep.subr.msk.mxu0 %vm219_vm2, %v529_v16 }
  0x8d   : > { %1864 = vmatmul.mubr.msk.f32.vlgmr.msra.gmra.mxu1 %vm215_vm3, %v1787_v13  ;;  %1866 = vmatprep.subr.mxu1 %v1969_v0 }
  0x8e   : > { %v526_v19 = vpop.permute.xlu1 %525  ;;  %v520_v20 = vpop.permute.xlu0 %519  ;;  %1867 = vmatpush3.msk.msra.mxu1 %vm219_vm2, %v2028_v1  ;;  %1795 = vmatmul.mubr.msk.f32.vlgmr.msra.gmra.mxu0 %vm215_vm3, %v196_v18 }
  0x8f   : > { %v530_v21 = vsel %vm527_vm4, %v524_v9, %v526_v19  ;;  %v528_v22 = vsel %vm527_vm4, %v520_v20, %v522_v15  ;;  %1868 = vmatprep.mubr.msk.f32.mxu1 %vm1970_vm0, %v1969_v0  ;;  %1871 = vmatprep.subr.mxu1 %v1969_v0 }
  0x90   : > { %1800 = vmatpush1.msk.msra.mxu0 %vm219_vm2, %v528_v22  ;;  %604 = vmatprep.mubr.f32.mxu0 %v1969_v0 }
  0x91   : > { %1869 = vmatmul.mubr.msk.f32.vlgmr.msra.gmra.mxu1 %vm215_vm3, %v196_v18 }
  0x92   : > { %1872 = vmatpush3.msk.msra.mxu1 %vm219_vm2, %v530_v21  ;;  %v691_v24 = vpop.permute.xlu1 %690  ;;  %v689_v25 = vpop.permute.xlu0 %688  ;;  %1873 = vmatprep.mubr.msk.f32.mxu1 %vm1970_vm0, %v1969_v0 }
  0x93   : > { %v696_v26 = vsel %vm694_vm5, %v689_v25, %v691_v24  ;;  %1876 = vmatprep.subr.mxu1 %v1969_v0  ;;  %1801 = vmatmul.mubr.msk.f32.vlgmr.msra.gmra.mxu0 %vm215_vm3, %v1798_v23 }
  0x94   : > { %1805 = vmatprep.subr.msk.mxu0 %vm219_vm2, %v696_v26  ;;  %771 = vmatprep.mubr.f32.mxu0 %v1969_v0 }
  0x95   : > { %1874 = vmatmul.mubr.msk.f32.vlgmr.msra.gmra.mxu1 %vm215_vm3, %v1798_v23 }
  0x96   : > { %v693_v27 = vpop.permute.xlu1 %692  ;;  %v687_v28 = vpop.permute.xlu0 %686  ;;  %1878 = vmatprep.mubr.msk.f32.mxu1 %vm1970_vm0, %v1969_v0 }
  0x97   : > { %v697_v30 = vsel %vm694_vm5, %v691_v24, %v693_v27  ;;  %v695_v31 = vsel %vm694_vm5, %v687_v28, %v689_v25 }
  0x98   : > { %1806 = vmatpush1.msk.msra.mxu0 %vm219_vm2, %v695_v31  ;;  %1877 = vmatpush3.msk.msra.mxu1 %vm219_vm2, %v697_v30 }
  0x99   : > { %1881 = vmatprep.subr.mxu1 %v1969_v0  ;;  %1807 = vmatmul.mubr.msk.f32.vlgmr.msra.gmra.mxu0 %vm215_vm3, %v1804_v29 }
  0x9a   : > { %v858_v32 = vpop.permute.xlu1 %857  ;;  %v856_v33 = vpop.permute.xlu0 %855  ;;  %1879 = vmatmul.mubr.msk.f32.vlgmr.msra.gmra.mxu1 %vm215_vm3, %v1804_v29  ;;  %938 = vmatprep.mubr.f32.mxu0 %v1969_v0 }
  0x9b   : > { %v863_v34 = vsel %vm861_vm6, %v856_v33, %v858_v32  ;;  %1883 = vmatprep.mubr.msk.f32.mxu1 %vm1970_vm0, %v1969_v0 }
  0x9c   : > { %1811 = vmatprep.subr.msk.mxu0 %vm219_vm2, %v863_v34 }
  0x9e   : > { %v860_v35 = vpop.permute.xlu1 %859  ;;  %v854_v36 = vpop.permute.xlu0 %853 }
  0x9f   : > { %v864_v38 = vsel %vm861_vm6, %v858_v32, %v860_v35  ;;  %v862_v39 = vsel %vm861_vm6, %v854_v36, %v856_v33 }
  0xa0   : > { %1812 = vmatpush1.msk.msra.mxu0 %vm219_vm2, %v862_v39  ;;  %1882 = vmatpush3.msk.msra.mxu1 %vm219_vm2, %v864_v38 }
  0xa1   : > { %1813 = vmatmul.mubr.msk.f32.vlgmr.msra.gmra.mxu0 %vm215_vm3, %v1810_v37  ;;  %1886 = vmatprep.subr.mxu1 %v1969_v0 }
  0xa2   : > { %v1025_v40 = vpop.permute.xlu1 %1024  ;;  %v1023_v41 = vpop.permute.xlu0 %1022  ;;  %1884 = vmatmul.mubr.msk.f32.vlgmr.msra.gmra.mxu1 %vm215_vm3, %v1810_v37  ;;  %1105 = vmatprep.mubr.f32.mxu0 %v1969_v0 }
  0xa3   : > { %v1030_v42 = vsel %vm1028_vm7, %v1023_v41, %v1025_v40  ;;  %1888 = vmatprep.mubr.msk.f32.mxu1 %vm1970_vm0, %v1969_v0 }
  0xa4   : > { %1817 = vmatprep.subr.msk.mxu0 %vm219_vm2, %v1030_v42 }
  0xa6   : > { %v1027_v43 = vpop.permute.xlu1 %1026  ;;  %v1021_v44 = vpop.permute.xlu0 %1020 }
  0xa7   : > { %v1031_v46 = vsel %vm1028_vm7, %v1025_v40, %v1027_v43  ;;  %v1029_v47 = vsel %vm1028_vm7, %v1021_v44, %v1023_v41 }
  0xa8   : > { %1818 = vmatpush1.msk.msra.mxu0 %vm219_vm2, %v1029_v47  ;;  %1887 = vmatpush3.msk.msra.mxu1 %vm219_vm2, %v1031_v46 }
  0xa9   : > { %1819 = vmatmul.mubr.msk.f32.vlgmr.msra.gmra.mxu0 %vm215_vm3, %v1816_v45  ;;  %1889 = vmatmul.mubr.msk.f32.vlgmr.msra.gmra.mxu1 %vm215_vm3, %v1816_v45 }
  0xaa   : > { %v1192_v48 = vpop.permute.xlu1 %1191  ;;  %v1190_v49 = vpop.permute.xlu0 %1189  ;;  %1891 = vmatprep.subr.mxu1 %v1969_v0  ;;  %1272 = vmatprep.mubr.f32.mxu0 %v1969_v0 }
  0xab   : > { %v1197_v50 = vsel %vm1195_vm8, %v1190_v49, %v1192_v48  ;;  %1893 = vmatprep.mubr.msk.f32.mxu1 %vm1970_vm0, %v1969_v0 }
  0xac   : > { %1823 = vmatprep.subr.msk.mxu0 %vm219_vm2, %v1197_v50 }
  0xae   : > { %v1194_v51 = vpop.permute.xlu1 %1193  ;;  %v1188_v52 = vpop.permute.xlu0 %1187 }
  0xaf   : > { %v1198_v54 = vsel %vm1195_vm8, %v1192_v48, %v1194_v51  ;;  %v1196_v55 = vsel %vm1195_vm8, %v1188_v52, %v1190_v49 }
  0xb0   : > { %1824 = vmatpush1.msk.msra.mxu0 %vm219_vm2, %v1196_v55  ;;  %1892 = vmatpush3.msk.msra.mxu1 %vm219_vm2, %v1198_v54 }
  0xb1   : > { %1825 = vmatmul.mubr.msk.f32.vlgmr.msra.gmra.mxu0 %vm215_vm3, %v1822_v53  ;;  %1894 = vmatmul.mubr.msk.f32.vlgmr.msra.gmra.mxu1 %vm215_vm3, %v1822_v53 }
  0xb2   : > { %v1359_v56 = vpop.permute.xlu1 %1358  ;;  %v1357_v57 = vpop.permute.xlu0 %1356  ;;  %1896 = vmatprep.subr.mxu1 %v1969_v0  ;;  %1439 = vmatprep.mubr.f32.mxu0 %v1969_v0 }
  0xb3   : > { %v1364_v58 = vsel %vm1362_vm9, %v1357_v57, %v1359_v56  ;;  %1898 = vmatprep.mubr.msk.f32.mxu1 %vm1970_vm0, %v1969_v0 }
  0xb4   : > { %1829 = vmatprep.subr.msk.mxu0 %vm219_vm2, %v1364_v58 }
  0xb6   : > { %v1361_v59 = vpop.permute.xlu1 %1360  ;;  %v1355_v60 = vpop.permute.xlu0 %1354 }
  0xb7   : > { %v1365_v62 = vsel %vm1362_vm9, %v1359_v56, %v1361_v59  ;;  %v1363_v63 = vsel %vm1362_vm9, %v1355_v60, %v1357_v57 }
  0xb8   : > { %1830 = vmatpush1.msk.msra.mxu0 %vm219_vm2, %v1363_v63  ;;  %1897 = vmatpush3.msk.msra.mxu1 %vm219_vm2, %v1365_v62 }
  0xb9   : > { %1831 = vmatmul.mubr.msk.f32.vlgmr.msra.gmra.mxu0 %vm215_vm3, %v1828_v61  ;;  %1899 = vmatmul.mubr.msk.f32.vlgmr.msra.gmra.mxu1 %vm215_vm3, %v1828_v61 }
  0xba   : > { %v1526_v1 = vpop.permute.xlu1 %1525  ;;  %v1524_v2 = vpop.permute.xlu0 %1523  ;;  %1901 = vmatprep.subr.mxu1 %v1969_v0  ;;  %1606 = vmatprep.mubr.f32.mxu0 %v1969_v0 }
  0xbb   : > { %v1531_v3 = vsel %vm1529_vm10, %v1524_v2, %v1526_v1  ;;  %1903 = vmatprep.mubr.msk.f32.mxu1 %vm1970_vm0, %v1969_v0 }
  0xbc   : > { %1835 = vmatprep.subr.msk.mxu0 %vm219_vm2, %v1531_v3 }
  0xbe   : > { %v1528_v4 = vpop.permute.xlu1 %1527  ;;  %v1522_v5 = vpop.permute.xlu0 %1521 }
  0xbf   : > { %v1532_v7 = vsel %vm1529_vm10, %v1526_v1, %v1528_v4  ;;  %v1530_v8 = vsel %vm1529_vm10, %v1522_v5, %v1524_v2 }
  0xc0   : > { %1836 = vmatpush1.msk.msra.mxu0 %vm219_vm2, %v1530_v8  ;;  %1902 = vmatpush3.msk.msra.mxu1 %vm219_vm2, %v1532_v7 }
  0xc1   : > { %1837 = vmatmul.mubr.msk.f32.vlgmr.msra.gmra.mxu0 %vm215_vm3, %v1834_v6  ;;  %1904 = vmatmul.mubr.msk.f32.vlgmr.msra.gmra.mxu1 %vm215_vm3, %v1834_v6 }
  0xcb   : > { %v1690_v60 = vpop.permute.xlu0 %1689 }
 0x14a   : > { %v292_v9 = vpop.f32.mrf.mxu0 }
 0x14c   : > { %v294_v0 = vpop.f32.mrf.mxu0 }
 0x14d   : > { %v363_v10 = vpop.f32.mrf.mxu1 }
 0x14e   : > { %v442_v11 = vpop.f32.mrf.mxu0 }
 0x14f   : > { %v1865_v12 = vpop.f32.mrf.mxu1  ;;  %v443_v30 = vadd.f32 %v442_v11, %v292_v9 }
 0x150   : > { %v444_v14 = vpop.f32.mrf.mxu0 }
 0x151   : > { %v513_v13 = vpop.f32.mrf.mxu1  ;;  %v445_v33 = vadd.f32 %v444_v14, %v294_v0 }
 0x152   : > { %v514_v31 = vadd.f32 %v513_v13, %v363_v10 }
 0x153   : > { %v1870_v15 = vpop.f32.mrf.mxu1  ;;  %v606_v17 = vpop.f32.mrf.mxu0 }
 0x154   : > { %v681_v34 = vadd.f32 %v606_v17, %v443_v30 }
 0x155   : > { %v677_v16 = vpop.f32.mrf.mxu1  ;;  %v608_v20 = vpop.f32.mrf.mxu0 }
 0x156   : > { %v683_v35 = vadd.f32 %v677_v16, %v514_v31  ;;  %v682_v39 = vadd.f32 %v608_v20, %v445_v33 }
 0x157   : > { %v1875_v18 = vpop.f32.mrf.mxu1 }
 0x159   : > { %v773_v22 = vpop.f32.mrf.mxu0 }
 0x15a   : > { %v844_v19 = vpop.f32.mrf.mxu1  ;;  %v848_v40 = vadd.f32 %v773_v22, %v681_v34 }
 0x15b   : > { %v775_v24 = vpop.f32.mrf.mxu0  ;;  %v850_v41 = vadd.f32 %v844_v19, %v683_v35 }
 0x15c   : > { %v1880_v21 = vpop.f32.mrf.mxu1  ;;  %v849_v43 = vadd.f32 %v775_v24, %v682_v39 }
 0x161   : > { %v940_v26 = vpop.f32.mrf.mxu0 }
 0x162   : > { %v1011_v23 = vpop.f32.mrf.mxu1  ;;  %v1015_v44 = vadd.f32 %v940_v26, %v848_v40 }
 0x163   : > { %v942_v28 = vpop.f32.mrf.mxu0  ;;  %v1017_v45 = vadd.f32 %v1011_v23, %v850_v41 }
 0x164   : > { %v1885_v25 = vpop.f32.mrf.mxu1  ;;  %v1016_v50 = vadd.f32 %v942_v28, %v849_v43 }
 0x169   : > { %v1178_v27 = vpop.f32.mrf.mxu1  ;;  %v1107_v32 = vpop.f32.mrf.mxu0 }
 0x16a   : > { %v1182_v51 = vadd.f32 %v1107_v32, %v1015_v44  ;;  %v1184_v52 = vadd.f32 %v1178_v27, %v1017_v45 }
 0x16b   : > { %v1890_v29 = vpop.f32.mrf.mxu1  ;;  %v1109_v37 = vpop.f32.mrf.mxu0 }
 0x16c   : > { %v1183_v53 = vadd.f32 %v1109_v37, %v1016_v50 }
 0x171   : > { %v1345_v36 = vpop.f32.mrf.mxu1  ;;  %v1274_v42 = vpop.f32.mrf.mxu0 }
 0x172   : > { %v1349_v54 = vadd.f32 %v1274_v42, %v1182_v51  ;;  %v1351_v55 = vadd.f32 %v1345_v36, %v1184_v52 }
 0x173   : > { %v1895_v38 = vpop.f32.mrf.mxu1  ;;  %v1276_v46 = vpop.f32.mrf.mxu0 }
 0x174   : > { %v1350_v57 = vadd.f32 %v1276_v46, %v1183_v53 }
 0x179   : > { %v1512_v47 = vpop.f32.mrf.mxu1  ;;  %v1441_v48 = vpop.f32.mrf.mxu0 }
 0x17a   : > { %v1516_v58 = vadd.f32 %v1441_v48, %v1349_v54  ;;  %v1518_v59 = vadd.f32 %v1512_v47, %v1351_v55 }
 0x17b   : > { %v1900_v49 = vpop.f32.mrf.mxu1  ;;  %v1443_v56 = vpop.f32.mrf.mxu0 }
 0x17c   : > { %v1517_v63 = vadd.f32 %v1443_v56, %v1350_v57 }
 0x181   : > { %v1608_v61 = vpop.f32.mrf.mxu0  ;;  %v1679_v62 = vpop.f32.mrf.mxu1 }
 0x182   : > { %v1683_v1 = vadd.f32 %v1608_v61, %v1516_v58  ;;  %v1685_v2 = vadd.f32 %v1679_v62, %v1518_v59 }
 0x183   : > { %v1610_v3 = vpop.f32.mrf.mxu0  ;;  %v1905_v4 = vpop.f32.mrf.mxu1 }
 0x184   : > { %v1684_v5 = vadd.f32 %v1610_v3, %v1517_v63  ;;  %v1692_v6 = vadd.f32 %v1690_v60, %v1683_v1  ;;  %v1694_v7 = vadd.f32 %v1690_v60, %v1685_v2 }
 0x186   : > { %v1693_v8 = vadd.f32 %v1690_v60, %v1684_v5  ;;  %1695 = vst [vmem:[%s192_s28] sm:$0xff] %v1692_v6  ;;  %1697 = vst [vmem:[%s192_s28 + $0x10] sm:$0xff] %v1694_v7 }
 0x188   : > { %1696 = vst [vmem:[%s192_s28 + $0x8] sm:$0xff] %v1693_v8 }
 0x189 PF: > { %s13_s14 = sadd.s32 1, %s1967_s14   ;;  %s2187_s12 = smov %s1963_s13 }
 0x18a   : > { %p10_p5 = scmp.ge.s32.totalorder %s13_s14, 4   ;;  %s2188_s13 = smov %s2190_s15 }
 0x18c   :  { %12 = sbr.rel (!%p10_p5) target bundleno = 2 (0x2), region = 70 }

</bundles_post_ra>
